<compile_context>
chip_gen: v5e
topology: v5e:2x2
jax: 0.10.0
libtpu: 0.0.40
codegen_flags: <defaults>
</compile_context>

<pallas_src>
import functools

import jax
import jax.numpy as jnp
from jax.experimental import pallas as pl
from jax.experimental.pallas import tpu as pltpu


def _round_up(x, m):
    return (x + m - 1) // m * m


def _pad2d(x, rows, cols):
    return jnp.pad(x, ((0, rows - x.shape[0]), (0, cols - x.shape[1])))


def _fused_sage_kernel(a_ref, h_ref, ws_ref, wn_ref, b_ref, o_ref, *, n_layers):
    """All SAGEConv('mean') layers fused: mean aggregation + self/neigh projection + bias (+ReLU)."""
    a = a_ref[...]                       # (Np, Np) bf16, degree-normalized adjacency
    h = h_ref[...]                       # (Np, Fp) bf16

    out = None
    for l in range(n_layers):            # unrolled: n_layers is a small compile-time constant
        # mean aggregation over in-neighbors (normalization pre-baked into A_norm)
        neigh = jnp.dot(a, h, preferred_element_type=jnp.float32).astype(jnp.bfloat16)

        # SAGEConv(mean): fc_self(h) + fc_neigh(neigh) + bias   (two K=Fp MXU matmuls, f32 acc)
        out = (jnp.dot(h, ws_ref[l], preferred_element_type=jnp.float32)
               + jnp.dot(neigh, wn_ref[l], preferred_element_type=jnp.float32)
               + b_ref[l])                                    # (Np, Fp) f32

        if l != n_layers - 1:
            # f32 epilogue (ReLU), re-cast to bf16 for the next layer's MXU operands
            h = jnp.maximum(out, 0.0).astype(jnp.bfloat16)

    o_ref[...] = out.astype(o_ref.dtype)


@jax.jit
def graphsage_forward(adj, inputs, params):
    """params: list of (W_self, W_neigh, bias); ReLU after every layer but the last."""
    n = adj.shape[0]
    n_layers = len(params)
    f_out_last = params[-1][0].shape[1]

    # lane-dense padding: features AND nodes to multiples of 128
    fp = _round_up(max([inputs.shape[1]] + [w.shape[1] for (w, _, _) in params]), 128)
    np_ = _round_up(n, 128)

    # degree-normalized adjacency (graph constant, computed once), bf16 MXU operand
    deg = jnp.sum(adj, axis=-1, keepdims=True)
    inv_deg = jnp.where(deg > 0.0, 1.0 / jnp.maximum(deg, 1.0), 0.0)
    a_norm = _pad2d(adj * inv_deg, np_, np_).astype(jnp.bfloat16)

    h0 = _pad2d(inputs, np_, fp).astype(jnp.bfloat16)        # dropout(p=0) == identity

    # stacked, zero-padded weight / bias slabs (resident in VMEM for the whole kernel)
    ws_all = jnp.stack([_pad2d(ws, fp, fp) for (ws, _, _) in params]).astype(jnp.bfloat16)
    wn_all = jnp.stack([_pad2d(wn, fp, fp) for (_, wn, _) in params]).astype(jnp.bfloat16)
    b_all = jnp.stack([_pad2d(b.reshape(1, -1), 1, fp) for (_, _, b) in params]).astype(jnp.float32)

    kernel = functools.partial(_fused_sage_kernel, n_layers=n_layers)
    out_pad = pl.pallas_call(
        kernel,
        out_shape=jax.ShapeDtypeStruct((np_, fp), jnp.float32),
        grid=(1,),
        in_specs=[
            pl.BlockSpec((np_, np_), lambda i: (0, 0)),
            pl.BlockSpec((np_, fp), lambda i: (0, 0)),
            pl.BlockSpec((n_layers, fp, fp), lambda i: (0, 0, 0)),
            pl.BlockSpec((n_layers, fp, fp), lambda i: (0, 0, 0)),
            pl.BlockSpec((n_layers, 1, fp), lambda i: (0, 0, 0)),
        ],
        out_specs=pl.BlockSpec((np_, fp), lambda i: (0, 0)),
        compiler_params=pltpu.CompilerParams(
            dimension_semantics=("arbitrary",),
            vmem_limit_bytes=64 * 1024 * 1024,
        ),
    )(a_norm, h0, ws_all, wn_all, b_all)

    return out_pad[:n, :f_out_last]


def _reference_forward(adj, inputs, params):
    """Pure-JAX reference mirroring the kernel's bf16 operand casts (f32 accumulation)."""
    deg = jnp.sum(adj, axis=-1, keepdims=True)
    a_norm = jnp.where(deg > 0.0, adj / jnp.maximum(deg, 1.0), 0.0).astype(jnp.bfloat16)
    h = inputs.astype(jnp.bfloat16)
    out = None
    for l, (ws, wn, b) in enumerate(params):
        neigh = jnp.dot(a_norm, h, preferred_element_type=jnp.float32).astype(jnp.bfloat16)
        out = (jnp.dot(h, ws.astype(jnp.bfloat16), preferred_element_type=jnp.float32)
               + jnp.dot(neigh, wn.astype(jnp.bfloat16), preferred_element_type=jnp.float32)
               + b)
        if l != len(params) - 1:
            h = jnp.maximum(out, 0.0).astype(jnp.bfloat16)
    return out


def _init_params(key, in_feats, n_hidden, n_classes, n_layers):
    dims = [in_feats] + [n_hidden] * n_layers + [n_classes]
    params = []
    for l in range(len(dims) - 1):
        f_in, f_out = dims[l], dims[l + 1]
        key, k1, k2 = jax.random.split(key, 3)
        scale = (2.0 / (f_in + f_out)) ** 0.5  # Xavier-ish, deterministic
        w_self = scale * jax.random.normal(k1, (f_in, f_out), jnp.float32)
        w_neigh = scale * jax.random.normal(k2, (f_in, f_out), jnp.float32)
        bias = jnp.zeros((1, f_out), jnp.float32)
        params.append((w_self, w_neigh, bias))
    return params


if __name__ == "__main__":
    # Small, deterministic problem:
    N = 128          # number of graph nodes
    IN_FEATS = 32
    N_HIDDEN = 64
    N_CLASSES = 16
    N_LAYERS = 2     # -> 3 SAGEConv layers total: 32->64, 64->64, 64->16

    key = jax.random.PRNGKey(0)
    key, k_adj, k_x, k_p = jax.random.split(key, 4)

    adj = jax.random.bernoulli(k_adj, p=0.1, shape=(N, N)).astype(jnp.float32)
    x = jax.random.normal(k_x, (N, IN_FEATS), jnp.float32)
    params = _init_params(k_p, IN_FEATS, N_HIDDEN, N_CLASSES, N_LAYERS)

    out = graphsage_forward(adj, x, params)
    out = jax.block_until_ready(out)

    ref = _reference_forward(adj, x, params)
    assert out.shape == (N, N_CLASSES), out.shape
    max_err = jnp.max(jnp.abs(out - ref))
    assert jnp.allclose(out, ref, atol=1e-2, rtol=1e-2), f"mismatch vs reference (max abs err {max_err})"

    print("KERNEL_OK")
</pallas_src>

<mosaic_0001>
module attributes {stable_mosaic.version = 11 : i64} {
  func.func @_fused_sage_kernel(%arg0: i32, %arg1: memref<128x128xbf16, #tpu.memory_space<vmem>>, %arg2: memref<128x128xbf16, #tpu.memory_space<vmem>>, %arg3: memref<3x128x128xbf16, #tpu.memory_space<vmem>>, %arg4: memref<3x128x128xbf16, #tpu.memory_space<vmem>>, %arg5: memref<3x1x128xf32, #tpu.memory_space<vmem>>, %arg6: memref<128x128xf32, #tpu.memory_space<vmem>>) attributes {dimension_semantics = [#tpu.dimension_semantics<arbitrary>], iteration_bounds = array<i64: 1>, scalar_prefetch = 0 : i64, scratch_operands = 0 : i64, tpu.core_type = #tpu.core_type<tc>, window_params = [{pipeline_mode = #tpu.pipeline_mode<synchronous>, transform_indices = @transform_0, window_bounds = array<i64: 128, 128>}, {pipeline_mode = #tpu.pipeline_mode<synchronous>, transform_indices = @transform_1, window_bounds = array<i64: 128, 128>}, {pipeline_mode = #tpu.pipeline_mode<synchronous>, transform_indices = @transform_2, window_bounds = array<i64: 3, 128, 128>}, {pipeline_mode = #tpu.pipeline_mode<synchronous>, transform_indices = @transform_3, window_bounds = array<i64: 3, 128, 128>}, {pipeline_mode = #tpu.pipeline_mode<synchronous>, transform_indices = @transform_4, window_bounds = array<i64: 3, 1, 128>}, {pipeline_mode = #tpu.pipeline_mode<synchronous>, transform_indices = @transform_5, window_bounds = array<i64: 128, 128>}]} {
    %c0 = arith.constant 0 : index
    %c0_0 = arith.constant 0 : index
    %0 = vector.load %arg1[%c0, %c0_0] : memref<128x128xbf16, #tpu.memory_space<vmem>>, vector<128x128xbf16>
    %c0_1 = arith.constant 0 : index
    %c0_2 = arith.constant 0 : index
    %1 = vector.load %arg2[%c0_1, %c0_2] : memref<128x128xbf16, #tpu.memory_space<vmem>>, vector<128x128xbf16>
    %cst = arith.constant dense<0.000000e+00> : vector<128x128xf32>
    %2 = tpu.matmul %0, %1, %cst {dimension_numbers = #tpu.dot_dimension_numbers<[1], [0], [0], [1], [0, 0, 1, 1], [], []>} : vector<128x128xbf16>, vector<128x128xbf16>, vector<128x128xf32> -> vector<128x128xf32>
    %3 = arith.truncf %2 : vector<128x128xf32> to vector<128x128xbf16>
    %c0_3 = arith.constant 0 : index
    %c0_4 = arith.constant 0 : index
    %c0_5 = arith.constant 0 : index
    %4 = vector.load %arg3[%c0_3, %c0_4, %c0_5] : memref<3x128x128xbf16, #tpu.memory_space<vmem>>, vector<1x128x128xbf16>
    %5 = vector.shape_cast %4 : vector<1x128x128xbf16> to vector<128x128xbf16>
    %cst_6 = arith.constant dense<0.000000e+00> : vector<128x128xf32>
    %6 = tpu.matmul %1, %5, %cst_6 {dimension_numbers = #tpu.dot_dimension_numbers<[1], [0], [0], [1], [0, 0, 1, 1], [], []>} : vector<128x128xbf16>, vector<128x128xbf16>, vector<128x128xf32> -> vector<128x128xf32>
    %c0_7 = arith.constant 0 : index
    %c0_8 = arith.constant 0 : index
    %c0_9 = arith.constant 0 : index
    %7 = vector.load %arg4[%c0_7, %c0_8, %c0_9] : memref<3x128x128xbf16, #tpu.memory_space<vmem>>, vector<1x128x128xbf16>
    %8 = vector.shape_cast %7 : vector<1x128x128xbf16> to vector<128x128xbf16>
    %cst_10 = arith.constant dense<0.000000e+00> : vector<128x128xf32>
    %9 = tpu.matmul %3, %8, %cst_10 {dimension_numbers = #tpu.dot_dimension_numbers<[1], [0], [0], [1], [0, 0, 1, 1], [], []>} : vector<128x128xbf16>, vector<128x128xbf16>, vector<128x128xf32> -> vector<128x128xf32>
    %10 = arith.addf %6, %9 : vector<128x128xf32>
    %c0_11 = arith.constant 0 : index
    %c0_12 = arith.constant 0 : index
    %c0_13 = arith.constant 0 : index
    %11 = vector.load %arg5[%c0_11, %c0_12, %c0_13] : memref<3x1x128xf32, #tpu.memory_space<vmem>>, vector<1x1x128xf32>
    %12 = vector.shape_cast %11 : vector<1x1x128xf32> to vector<1x128xf32>
    %13 = vector.broadcast %12 : vector<1x128xf32> to vector<128x128xf32>
    %14 = arith.addf %10, %13 : vector<128x128xf32>
    %cst_14 = arith.constant 0.000000e+00 : f32
    %15 = vector.broadcast %cst_14 : f32 to vector<128x128xf32>
    %16 = arith.maximumf %14, %15 : vector<128x128xf32>
    %17 = arith.truncf %16 : vector<128x128xf32> to vector<128x128xbf16>
    %cst_15 = arith.constant dense<0.000000e+00> : vector<128x128xf32>
    %18 = tpu.matmul %0, %17, %cst_15 {dimension_numbers = #tpu.dot_dimension_numbers<[1], [0], [0], [1], [0, 0, 1, 1], [], []>} : vector<128x128xbf16>, vector<128x128xbf16>, vector<128x128xf32> -> vector<128x128xf32>
    %19 = arith.truncf %18 : vector<128x128xf32> to vector<128x128xbf16>
    %c1 = arith.constant 1 : index
    %c0_16 = arith.constant 0 : index
    %c0_17 = arith.constant 0 : index
    %20 = vector.load %arg3[%c1, %c0_16, %c0_17] : memref<3x128x128xbf16, #tpu.memory_space<vmem>>, vector<1x128x128xbf16>
    %21 = vector.shape_cast %20 : vector<1x128x128xbf16> to vector<128x128xbf16>
    %cst_18 = arith.constant dense<0.000000e+00> : vector<128x128xf32>
    %22 = tpu.matmul %17, %21, %cst_18 {dimension_numbers = #tpu.dot_dimension_numbers<[1], [0], [0], [1], [0, 0, 1, 1], [], []>} : vector<128x128xbf16>, vector<128x128xbf16>, vector<128x128xf32> -> vector<128x128xf32>
    %c1_19 = arith.constant 1 : index
    %c0_20 = arith.constant 0 : index
    %c0_21 = arith.constant 0 : index
    %23 = vector.load %arg4[%c1_19, %c0_20, %c0_21] : memref<3x128x128xbf16, #tpu.memory_space<vmem>>, vector<1x128x128xbf16>
    %24 = vector.shape_cast %23 : vector<1x128x128xbf16> to vector<128x128xbf16>
    %cst_22 = arith.constant dense<0.000000e+00> : vector<128x128xf32>
    %25 = tpu.matmul %19, %24, %cst_22 {dimension_numbers = #tpu.dot_dimension_numbers<[1], [0], [0], [1], [0, 0, 1, 1], [], []>} : vector<128x128xbf16>, vector<128x128xbf16>, vector<128x128xf32> -> vector<128x128xf32>
    %26 = arith.addf %22, %25 : vector<128x128xf32>
    %c1_23 = arith.constant 1 : index
    %c0_24 = arith.constant 0 : index
    %c0_25 = arith.constant 0 : index
    %27 = vector.load %arg5[%c1_23, %c0_24, %c0_25] : memref<3x1x128xf32, #tpu.memory_space<vmem>>, vector<1x1x128xf32>
    %28 = vector.shape_cast %27 : vector<1x1x128xf32> to vector<1x128xf32>
    %29 = vector.broadcast %28 : vector<1x128xf32> to vector<128x128xf32>
    %30 = arith.addf %26, %29 : vector<128x128xf32>
    %cst_26 = arith.constant 0.000000e+00 : f32
    %31 = vector.broadcast %cst_26 : f32 to vector<128x128xf32>
    %32 = arith.maximumf %30, %31 : vector<128x128xf32>
    %33 = arith.truncf %32 : vector<128x128xf32> to vector<128x128xbf16>
    %cst_27 = arith.constant dense<0.000000e+00> : vector<128x128xf32>
    %34 = tpu.matmul %0, %33, %cst_27 {dimension_numbers = #tpu.dot_dimension_numbers<[1], [0], [0], [1], [0, 0, 1, 1], [], []>} : vector<128x128xbf16>, vector<128x128xbf16>, vector<128x128xf32> -> vector<128x128xf32>
    %35 = arith.truncf %34 : vector<128x128xf32> to vector<128x128xbf16>
    %c2 = arith.constant 2 : index
    %c0_28 = arith.constant 0 : index
    %c0_29 = arith.constant 0 : index
    %36 = vector.load %arg3[%c2, %c0_28, %c0_29] : memref<3x128x128xbf16, #tpu.memory_space<vmem>>, vector<1x128x128xbf16>
    %37 = vector.shape_cast %36 : vector<1x128x128xbf16> to vector<128x128xbf16>
    %cst_30 = arith.constant dense<0.000000e+00> : vector<128x128xf32>
    %38 = tpu.matmul %33, %37, %cst_30 {dimension_numbers = #tpu.dot_dimension_numbers<[1], [0], [0], [1], [0, 0, 1, 1], [], []>} : vector<128x128xbf16>, vector<128x128xbf16>, vector<128x128xf32> -> vector<128x128xf32>
    %c2_31 = arith.constant 2 : index
    %c0_32 = arith.constant 0 : index
    %c0_33 = arith.constant 0 : index
    %39 = vector.load %arg4[%c2_31, %c0_32, %c0_33] : memref<3x128x128xbf16, #tpu.memory_space<vmem>>, vector<1x128x128xbf16>
    %40 = vector.shape_cast %39 : vector<1x128x128xbf16> to vector<128x128xbf16>
    %cst_34 = arith.constant dense<0.000000e+00> : vector<128x128xf32>
    %41 = tpu.matmul %35, %40, %cst_34 {dimension_numbers = #tpu.dot_dimension_numbers<[1], [0], [0], [1], [0, 0, 1, 1], [], []>} : vector<128x128xbf16>, vector<128x128xbf16>, vector<128x128xf32> -> vector<128x128xf32>
    %42 = arith.addf %38, %41 : vector<128x128xf32>
    %c2_35 = arith.constant 2 : index
    %c0_36 = arith.constant 0 : index
    %c0_37 = arith.constant 0 : index
    %43 = vector.load %arg5[%c2_35, %c0_36, %c0_37] : memref<3x1x128xf32, #tpu.memory_space<vmem>>, vector<1x1x128xf32>
    %44 = vector.shape_cast %43 : vector<1x1x128xf32> to vector<1x128xf32>
    %45 = vector.broadcast %44 : vector<1x128xf32> to vector<128x128xf32>
    %46 = arith.addf %42, %45 : vector<128x128xf32>
    %c0_38 = arith.constant 0 : index
    %c0_39 = arith.constant 0 : index
    %47 = vector.load %arg6[%c0_38, %c0_39] : memref<128x128xf32, #tpu.memory_space<vmem>>, vector<128x128xf32>
    tpu.vector_store %arg6[%c0_38, %c0_39], %46 {strides = array<i32>} : memref<128x128xf32, #tpu.memory_space<vmem>>, vector<128x128xf32>,
    return
  }
  func.func @transform_0(%arg0: i32) -> (i32, i32) {
    %c0_i32 = arith.constant 0 : i32
    %c0_i32_0 = arith.constant 0 : i32
    %c0_i32_1 = arith.constant 0 : i32
    return %c0_i32, %c0_i32_0 : i32, i32
  }
  func.func @transform_1(%arg0: i32) -> (i32, i32) {
    %c0_i32 = arith.constant 0 : i32
    %c0_i32_0 = arith.constant 0 : i32
    %c0_i32_1 = arith.constant 0 : i32
    return %c0_i32, %c0_i32_0 : i32, i32
  }
  func.func @transform_2(%arg0: i32) -> (i32, i32, i32) {
    %c0_i32 = arith.constant 0 : i32
    %c0_i32_0 = arith.constant 0 : i32
    %c0_i32_1 = arith.constant 0 : i32
    %c0_i32_2 = arith.constant 0 : i32
    return %c0_i32, %c0_i32_0, %c0_i32_1 : i32, i32, i32
  }
  func.func @transform_3(%arg0: i32) -> (i32, i32, i32) {
    %c0_i32 = arith.constant 0 : i32
    %c0_i32_0 = arith.constant 0 : i32
    %c0_i32_1 = arith.constant 0 : i32
    %c0_i32_2 = arith.constant 0 : i32
    return %c0_i32, %c0_i32_0, %c0_i32_1 : i32, i32, i32
  }
  func.func @transform_4(%arg0: i32) -> (i32, i32, i32) {
    %c0_i32 = arith.constant 0 : i32
    %c0_i32_0 = arith.constant 0 : i32
    %c0_i32_1 = arith.constant 0 : i32
    %c0_i32_2 = arith.constant 0 : i32
    return %c0_i32, %c0_i32_0, %c0_i32_1 : i32, i32, i32
  }
  func.func @transform_5(%arg0: i32) -> (i32, i32) {
    %c0_i32 = arith.constant 0 : i32
    %c0_i32_0 = arith.constant 0 : i32
    %c0_i32_1 = arith.constant 0 : i32
    return %c0_i32, %c0_i32_0 : i32, i32
  }
}

</mosaic_0001>

<bundles_post_ra>
// kernel: graphsage_forward.1
= control target key start
LH: loop header
LB: loop body
LE: loop exit
PB: predicated region body
PF: predicated region fallthrough
CT: control target
= control target key end

     0   :  { %s1983_s1 = inlined_call_operand.vmem [shape: bf16[128,128], index: 1, kind: input, shape index: {}]   ;;  %s1984_s2 = inlined_call_operand.vmem [shape: bf16[3,128,128], index: 2, kind: input, shape index: {}]   ;;  %s1985_s3 = inlined_call_operand.vmem [shape: bf16[3,128,128], index: 3, kind: input, shape index: {}]   ;;  %s1986_s0 = inlined_call_operand.vmem [shape: bf16[128,128], index: 0, kind: input, shape index: {}]   ;;  %s1987_s4 = inlined_call_operand.vmem [shape: f32[3,1,128], index: 4, kind: input, shape index: {}]   ;;  %s1988_s5 = inlined_call_operand.vmem [shape: f32[128,128], index: 5, kind: output, shape index: {}]  }
   0x1   :  { %v1577_v0 = vld [vmem:[%s1983_s1 + $0x38] sm:$0xff]  ;;  %v1583_v1 = vld [vmem:[%s1983_s1 + $0x30] sm:$0xff]  ;;  %v1592_v2 = vld [vmem:[%s1983_s1 + $0x28] sm:$0xff] }
   0x2   :  { %148 = vmatpush.bf16.msra.mxu0 %v1577_v0  ;;  %1517 = vmatpush.bf16.msra.mxu1 %v1577_v0  ;;  %v1601_v3 = vld [vmem:[%s1983_s1 + $0x20] sm:$0xff]  ;;  %v1610_v4 = vld [vmem:[%s1983_s1 + $0x18] sm:$0xff]  ;;  %v1619_v5 = vld [vmem:[%s1983_s1 + $0x10] sm:$0xff] }
   0x3   :  { %1518 = vmatpush.bf16.msra.mxu2 %v1577_v0  ;;  %1519 = vmatpush.bf16.msra.mxu3 %v1577_v0  ;;  %v1462_v6 = vld [vmem:[%s1983_s1 + $0x8] sm:$0xff]  ;;  %v1461_v7 = vld [vmem:[%s1983_s1] sm:$0xff]  ;;  %v1476_v8 = vld [vmem:[%s1984_s2 + $0x38] sm:$0xff] }
   0x4   :  { %v1484_v9 = vld [vmem:[%s1985_s3 + $0x38] sm:$0xff]  ;;  %v1643_v10 = vld [vmem:[%s1986_s0] sm:$0xff]  ;;  %v1648_v11 = vld [vmem:[%s1986_s0 + $0x10] sm:$0xff] }
   0x5   :  { %v1653_v12 = vld [vmem:[%s1986_s0 + $0x20] sm:$0xff]  ;;  %v1658_v13 = vld [vmem:[%s1986_s0 + $0x30] sm:$0xff]  ;;  %v1474_v16 = vld [vmem:[%s1984_s2 + $0x28] sm:$0xff] }
   0x6   :  { %149 = vmatpush.bf16.msra.mxu0 %v1583_v1  ;;  %1520 = vmatpush.bf16.msra.mxu1 %v1583_v1  ;;  %v1475_v14 = vld [vmem:[%s1984_s2 + $0x30] sm:$0xff]  ;;  %v1482_v17 = vld [vmem:[%s1985_s3 + $0x28] sm:$0xff]  ;;  %v1473_v18 = vld [vmem:[%s1984_s2 + $0x20] sm:$0xff] }
   0x7   :  { %1521 = vmatpush.bf16.msra.mxu2 %v1583_v1  ;;  %1522 = vmatpush.bf16.msra.mxu3 %v1583_v1  ;;  %v1483_v15 = vld [vmem:[%s1985_s3 + $0x30] sm:$0xff]  ;;  %v1481_v19 = vld [vmem:[%s1985_s3 + $0x20] sm:$0xff]  ;;  %v1472_v20 = vld [vmem:[%s1984_s2 + $0x18] sm:$0xff] }
   0x8   :  { %v1480_v21 = vld [vmem:[%s1985_s3 + $0x18] sm:$0xff]  ;;  %v1691_v22 = vld [vmem:[%s1986_s0 + $0x8] sm:$0xff]  ;;  %v1471_v26 = vld [vmem:[%s1984_s2 + $0x10] sm:$0xff] }
   0x9   :  { %v1696_v23 = vld [vmem:[%s1986_s0 + $0x18] sm:$0xff]  ;;  %v1701_v24 = vld [vmem:[%s1986_s0 + $0x28] sm:$0xff]  ;;  %v1469_v28 = vld [vmem:[%s1984_s2] sm:$0xff] }
   0xa   :  { %150 = vmatpush.bf16.msra.mxu0 %v1592_v2  ;;  %1523 = vmatpush.bf16.msra.mxu1 %v1592_v2  ;;  %v1706_v25 = vld [vmem:[%s1986_s0 + $0x38] sm:$0xff]  ;;  %v1470_v27 = vld [vmem:[%s1984_s2 + $0x8] sm:$0xff]  ;;  %v1479_v29 = vld [vmem:[%s1985_s3 + $0x10] sm:$0xff] }
   0xb   :  { %1524 = vmatpush.bf16.msra.mxu2 %v1592_v2  ;;  %1525 = vmatpush.bf16.msra.mxu3 %v1592_v2  ;;  %v1478_v30 = vld [vmem:[%s1985_s3 + $0x8] sm:$0xff]  ;;  %v1477_v31 = vld [vmem:[%s1985_s3] sm:$0xff]  ;;  %v1492_v47 = vld [vmem:[%s1984_s2 + $0x78] sm:$0xff] }
   0xc   :  { %v1491_v52 = vld [vmem:[%s1984_s2 + $0x70] sm:$0xff]  ;;  %v1490_v53 = vld [vmem:[%s1984_s2 + $0x68] sm:$0xff]  ;;  %v1489_v54 = vld [vmem:[%s1984_s2 + $0x60] sm:$0xff] }
   0xd   :  { %v1488_v56 = vld [vmem:[%s1984_s2 + $0x58] sm:$0xff]  ;;  %v1487_v60 = vld [vmem:[%s1984_s2 + $0x50] sm:$0xff]  ;;  %v1486_v61 = vld [vmem:[%s1984_s2 + $0x48] sm:$0xff] }
   0xe   :  { %151 = vmatpush.bf16.msra.mxu0 %v1601_v3  ;;  %1526 = vmatpush.bf16.msra.mxu1 %v1601_v3  ;;  %v1485_v63 = vld [vmem:[%s1984_s2 + $0x40] sm:$0xff] }
   0xf   :  { %1527 = vmatpush.bf16.msra.mxu2 %v1601_v3  ;;  %1528 = vmatpush.bf16.msra.mxu3 %v1601_v3 }
  0x12   :  { %152 = vmatpush.bf16.msra.mxu0 %v1610_v4  ;;  %1529 = vmatpush.bf16.msra.mxu1 %v1610_v4 }
  0x13   :  { %1530 = vmatpush.bf16.msra.mxu2 %v1610_v4  ;;  %1531 = vmatpush.bf16.msra.mxu3 %v1610_v4 }
  0x16   :  { %153 = vmatpush.bf16.msra.mxu0 %v1619_v5  ;;  %1532 = vmatpush.bf16.msra.mxu1 %v1619_v5 }
  0x17   :  { %1533 = vmatpush.bf16.msra.mxu2 %v1619_v5  ;;  %1534 = vmatpush.bf16.msra.mxu3 %v1619_v5 }
  0x1a   :  { %154 = vmatpush.bf16.msra.mxu0 %v1462_v6  ;;  %1535 = vmatpush.bf16.msra.mxu1 %v1462_v6 }
  0x1b   :  { %1536 = vmatpush.bf16.msra.mxu2 %v1462_v6  ;;  %1537 = vmatpush.bf16.msra.mxu3 %v1462_v6 }
  0x1e   :  { %155 = vmatpush.bf16.msra.mxu0 %v1461_v7  ;;  %1538 = vmatpush.bf16.msra.mxu1 %v1461_v7 }
  0x1f   :  { %1539 = vmatpush.bf16.msra.mxu2 %v1461_v7  ;;  %1540 = vmatpush.bf16.msra.mxu3 %v1461_v7 }
  0x21   :  { %156 = vmatmul.bf16.vlgmr.msra.gmra.mxu0 %v1643_v10  ;;  %166 = vmatmul.bf16.vlgmr.msra.gmra.mxu1 %v1648_v11 }
  0x22   :  { %285 = vmatpush.bf16.msrb.mxu1 %v1484_v9  ;;  %176 = vmatmul.bf16.vlgmr.msra.gmra.mxu2 %v1653_v12 }
  0x23   :  { %382 = vmatpush.bf16.msrb.mxu2 %v1476_v8  ;;  %186 = vmatmul.bf16.vlgmr.msra.gmra.mxu3 %v1658_v13 }
  0x26   :  { %286 = vmatpush.bf16.msrb.mxu1 %v1483_v15 }
  0x27   :  { %383 = vmatpush.bf16.msrb.mxu2 %v1475_v14 }
  0x2a   :  { %287 = vmatpush.bf16.msrb.mxu1 %v1482_v17 }
  0x2b   :  { %384 = vmatpush.bf16.msrb.mxu2 %v1474_v16 }
  0x2e   :  { %288 = vmatpush.bf16.msrb.mxu1 %v1481_v19 }
  0x2f   :  { %385 = vmatpush.bf16.msrb.mxu2 %v1473_v18 }
  0x31   :  { %161 = vmatmul.bf16.gmra.mxu0 %v1691_v22  ;;  %171 = vmatmul.bf16.gmra.mxu1 %v1696_v23 }
  0x32   :  { %289 = vmatpush.bf16.msrb.mxu1 %v1480_v21  ;;  %181 = vmatmul.bf16.gmra.mxu2 %v1701_v24 }
  0x33   :  { %386 = vmatpush.bf16.msrb.mxu2 %v1472_v20  ;;  %191 = vmatmul.bf16.gmra.mxu3 %v1706_v25 }
  0x36   :  { %290 = vmatpush.bf16.msrb.mxu1 %v1479_v29 }
  0x37   :  { %387 = vmatpush.bf16.msrb.mxu2 %v1471_v26 }
  0x3a   :  { %291 = vmatpush.bf16.msrb.mxu1 %v1478_v30 }
  0x3b   :  { %388 = vmatpush.bf16.msrb.mxu2 %v1470_v27 }
  0x3e   :  { %292 = vmatpush.bf16.msrb.mxu1 %v1477_v31 }
  0x3f   :  { %389 = vmatpush.bf16.msrb.mxu2 %v1469_v28 }
  0x42   :  { %390 = vmatmul.bf16.vlgmr.msrb.gmra.mxu2 %v1461_v7  ;;  %711 = vmatpush.bf16.msra.mxu1 %v1492_v47 }
  0x46   :  { %712 = vmatpush.bf16.msra.mxu1 %v1491_v52 }
  0x4a   :  { %713 = vmatpush.bf16.msra.mxu1 %v1490_v53 }
  0x4e   :  { %714 = vmatpush.bf16.msra.mxu1 %v1489_v54 }
  0x52   :  { %395 = vmatmul.bf16.gmra.mxu2 %v1462_v6  ;;  %715 = vmatpush.bf16.msra.mxu1 %v1488_v56  ;;  %v1763_v6 = vld [vmem:[%s1987_s4] ss:$0 sm:$0xff] }
  0x56   :  { %716 = vmatpush.bf16.msra.mxu1 %v1487_v60 }
  0x5a   :  { %717 = vmatpush.bf16.msra.mxu1 %v1486_v61 }
  0x5e   :  { %718 = vmatpush.bf16.msra.mxu1 %v1485_v63 }
  0x62   :  { %400 = vmatmul.bf16.gmra.mxu2 %v1619_v5 }
  0x72   :  { %405 = vmatmul.bf16.gmra.mxu2 %v1610_v4 }
  0x82   :  { %410 = vmatmul.bf16.gmra.mxu2 %v1601_v3 }
  0x92   :  { %415 = vmatmul.bf16.gmra.mxu2 %v1592_v2 }
  0x9e   :  { %v157_v32 = vpop.f32.mrf.mxu0  ;;  %v167_v37 = vpop.f32.mrf.mxu1 }
  0xa2   :  { %420 = vmatmul.bf16.gmra.mxu2 %v1583_v1 }
  0xa5   :  { %v177_v43 = vpop.f32.mrf.mxu2 }
  0xa6   :  { %v159_v33 = vpop.f32.mrf.mxu0  ;;  %v169_v39 = vpop.f32.mrf.mxu1 }
  0xa7   :  { %v197_v34 = vpack.c.bf16 %v159_v33, %v157_v32  ;;  %v199_v40 = vpack.c.bf16 %v169_v39, %v167_v37  ;;  %v187_v50 = vpop.f32.mrf.mxu3 }
  0xa9   :  { %293 = vmatmul.bf16.vlgmr.msrb.gmra.mxu1 %v197_v34 }
  0xad   :  { %v179_v45 = vpop.f32.mrf.mxu2 }
  0xae   :  { %v162_v35 = vpop.f32.mrf.mxu0  ;;  %v172_v41 = vpop.f32.mrf.mxu1  ;;  %v201_v46 = vpack.c.bf16 %v179_v45, %v177_v43 }
  0xaf   :  { %v189_v55 = vpop.f32.mrf.mxu3 }
  0xb0   :  { %v203_v57 = vpack.c.bf16 %v189_v55, %v187_v50 }
  0xb2   :  { %425 = vmatmul.bf16.gmra.mxu2 %v1577_v0 }
  0xb5   :  { %v182_v48 = vpop.f32.mrf.mxu2 }
  0xb6   :  { %v164_v36 = vpop.f32.mrf.mxu0  ;;  %v174_v42 = vpop.f32.mrf.mxu1 }
  0xb7   :  { %v198_v38 = vpack.c.bf16 %v164_v36, %v162_v35  ;;  %v200_v44 = vpack.c.bf16 %v174_v42, %v172_v41  ;;  %v192_v59 = vpop.f32.mrf.mxu3 }
  0xb9   :  { %298 = vmatmul.bf16.gmra.mxu1 %v198_v38 }
  0xbd   :  { %v184_v49 = vpop.f32.mrf.mxu2 }
  0xbe   :  { %v202_v51 = vpack.c.bf16 %v184_v49, %v182_v48 }
  0xbf   :  { %v194_v0 = vpop.f32.mrf.mxu3 }
  0xc0   :  { %v204_v1 = vpack.c.bf16 %v194_v0, %v192_v59 }
  0xc5   :  { %v391_v58 = vpop.f32.mrf.mxu2 }
  0xc9   :  { %303 = vmatmul.bf16.gmra.mxu1 %v199_v40 }
  0xcd   :  { %v393_v62 = vpop.f32.mrf.mxu2 }
  0xd5   :  { %v396_v2 = vpop.f32.mrf.mxu2 }
  0xd9   :  { %308 = vmatmul.bf16.gmra.mxu1 %v200_v44 }
  0xdd   :  { %v398_v4 = vpop.f32.mrf.mxu2 }
  0xe5   :  { %v401_v14 = vpop.f32.mrf.mxu2 }
  0xe9   :  { %313 = vmatmul.bf16.gmra.mxu1 %v201_v46 }
  0xed   :  { %v403_v20 = vpop.f32.mrf.mxu2 }
  0xf5   :  { %v406_v32 = vpop.f32.mrf.mxu2 }
  0xf9   :  { %318 = vmatmul.bf16.gmra.mxu1 %v202_v51 }
  0xfd   :  { %v408_v37 = vpop.f32.mrf.mxu2 }
 0x105   :  { %v411_v45 = vpop.f32.mrf.mxu2 }
 0x109   :  { %323 = vmatmul.bf16.gmra.mxu1 %v203_v57 }
 0x10d   :  { %v413_v51 = vpop.f32.mrf.mxu2 }
 0x115   :  { %v416_v57 = vpop.f32.mrf.mxu2 }
 0x119   :  { %328 = vmatmul.bf16.gmra.mxu1 %v204_v1 }
 0x126   :  { %v294_v3 = vpop.f32.mrf.mxu1 }
 0x127   :  { %v392_v5 = vadd.f32 %v391_v58, %v294_v3 }
 0x129   :  { %v435_v8 = vadd.f32 %v1763_v6, %v392_v5 }
 0x12b   :  { %v451_v16 = vmax.f32 %v435_v8, 0.0 }
 0x12e   :  { %v296_v7 = vpop.f32.mrf.mxu1 }
 0x12f   :  { %v394_v9 = vadd.f32 %v393_v62, %v296_v7 }
 0x131   :  { %v436_v15 = vadd.f32 %v1763_v6, %v394_v9 }
 0x133   :  { %v452_v17 = vmax.f32 %v436_v15, 0.0 }
 0x135   :  { %v1767_v18 = vpack.c.bf16 %v452_v17, %v451_v16 }
 0x136   :  { %v299_v19 = vpop.f32.mrf.mxu1 }
 0x137   :  { %719 = vmatmul.bf16.vlgmr.msra.gmra.mxu1 %v1767_v18  ;;  %v397_v21 = vadd.f32 %v396_v2, %v299_v19  ;;  %v418_v2 = vpop.f32.mrf.mxu2 }
 0x139   :  { %v437_v27 = vadd.f32 %v1763_v6, %v397_v21 }
 0x13b   :  { %v453_v30 = vmax.f32 %v437_v27, 0.0 }
 0x13e   :  { %v301_v26 = vpop.f32.mrf.mxu1 }
 0x13f   :  { %v399_v28 = vadd.f32 %v398_v4, %v301_v26  ;;  %v421_v8 = vpop.f32.mrf.mxu2 }
 0x141   :  { %v438_v29 = vadd.f32 %v1763_v6, %v399_v28 }
 0x143   :  { %v454_v31 = vmax.f32 %v438_v29, 0.0 }
 0x145   :  { %v1772_v33 = vpack.c.bf16 %v454_v31, %v453_v30 }
 0x146   :  { %v304_v34 = vpop.f32.mrf.mxu1 }
 0x147   :  { %724 = vmatmul.bf16.gmra.mxu1 %v1772_v33  ;;  %v402_v35 = vadd.f32 %v401_v14, %v304_v34  ;;  %v423_v19 = vpop.f32.mrf.mxu2 }
 0x149   :  { %v439_v38 = vadd.f32 %v1763_v6, %v402_v35 }
 0x14b   :  { %v455_v41 = vmax.f32 %v439_v38, 0.0 }
 0x14e   :  { %v306_v36 = vpop.f32.mrf.mxu1 }
 0x14f   :  { %v404_v39 = vadd.f32 %v403_v20, %v306_v36  ;;  %v426_v31 = vpop.f32.mrf.mxu2 }
 0x151   :  { %v440_v40 = vadd.f32 %v1763_v6, %v404_v39 }
 0x153   :  { %v456_v42 = vmax.f32 %v440_v40, 0.0 }
 0x155   :  { %v1777_v43 = vpack.c.bf16 %v456_v42, %v455_v41 }
 0x156   :  { %v309_v44 = vpop.f32.mrf.mxu1 }
 0x157   :  { %729 = vmatmul.bf16.gmra.mxu1 %v1777_v43  ;;  %v407_v46 = vadd.f32 %v406_v32, %v309_v44  ;;  %v428_v36 = vpop.f32.mrf.mxu2 }
 0x159   :  { %v441_v48 = vadd.f32 %v1763_v6, %v407_v46  ;;  %v1495_v46 = vld [vmem:[%s1985_s3 + $0x50] sm:$0xff] }
 0x15b   :  { %v457_v52 = vmax.f32 %v441_v48, 0.0  ;;  %v1493_v48 = vld [vmem:[%s1985_s3 + $0x40] sm:$0xff] }
 0x15e   :  { %v311_v47 = vpop.f32.mrf.mxu1 }
 0x15f   :  { %v409_v49 = vadd.f32 %v408_v37, %v311_v47  ;;  %v1494_v47 = vld [vmem:[%s1985_s3 + $0x48] sm:$0xff] }
 0x161   :  { %v442_v50 = vadd.f32 %v1763_v6, %v409_v49 }
 0x163   :  { %v458_v53 = vmax.f32 %v442_v50, 0.0 }
 0x165   :  { %v470_v54 = vpack.c.bf16 %v458_v53, %v457_v52 }
 0x166   :  { %v314_v55 = vpop.f32.mrf.mxu1 }
 0x167   :  { %734 = vmatmul.bf16.gmra.mxu1 %v470_v54  ;;  %v412_v56 = vadd.f32 %v411_v45, %v314_v55  ;;  %v1496_v45 = vld [vmem:[%s1985_s3 + $0x58] sm:$0xff] }
 0x169   :  { %v443_v59 = vadd.f32 %v1763_v6, %v412_v56 }
 0x16b   :  { %v459_v62 = vmax.f32 %v443_v59, 0.0 }
 0x16e   :  { %v316_v58 = vpop.f32.mrf.mxu1 }
 0x16f   :  { %v414_v60 = vadd.f32 %v413_v51, %v316_v58 }
 0x171   :  { %v444_v61 = vadd.f32 %v1763_v6, %v414_v60 }
 0x173   :  { %v460_v63 = vmax.f32 %v444_v61, 0.0 }
 0x175   :  { %v471_v0 = vpack.c.bf16 %v460_v63, %v459_v62 }
 0x176   :  { %v319_v1 = vpop.f32.mrf.mxu1 }
 0x177   :  { %739 = vmatmul.bf16.gmra.mxu1 %v471_v0  ;;  %v417_v3 = vadd.f32 %v416_v57, %v319_v1 }
 0x179   :  { %v445_v5 = vadd.f32 %v1763_v6, %v417_v3 }
 0x17b   :  { %v461_v14 = vmax.f32 %v445_v5, 0.0  ;;  %v1506_v5 = vld [vmem:[%s1984_s2 + $0xa8] sm:$0xff] }
 0x17e   :  { %v321_v4 = vpop.f32.mrf.mxu1 }
 0x17f   :  { %v419_v7 = vadd.f32 %v418_v2, %v321_v4  ;;  %v1508_v2 = vld [vmem:[%s1984_s2 + $0xb8] sm:$0xff]  ;;  %v1507_v4 = vld [vmem:[%s1984_s2 + $0xb0] sm:$0xff] }
 0x181   :  { %v446_v9 = vadd.f32 %v1763_v6, %v419_v7 }
 0x183   :  { %v462_v15 = vmax.f32 %v446_v9, 0.0 }
 0x185   :  { %v472_v16 = vpack.c.bf16 %v462_v15, %v461_v14  ;;  %v1504_v14 = vld [vmem:[%s1984_s2 + $0x98] sm:$0xff] }
 0x186   :  { %v324_v17 = vpop.f32.mrf.mxu1 }
 0x187   :  { %744 = vmatmul.bf16.gmra.mxu1 %v472_v16  ;;  %v422_v20 = vadd.f32 %v421_v8, %v324_v17  ;;  %v1505_v8 = vld [vmem:[%s1984_s2 + $0xa0] sm:$0xff]  ;;  %v1503_v17 = vld [vmem:[%s1984_s2 + $0x90] sm:$0xff] }
 0x189   :  { %v447_v26 = vadd.f32 %v1763_v6, %v422_v20  ;;  %v1502_v20 = vld [vmem:[%s1984_s2 + $0x88] sm:$0xff] }
 0x18b   :  { %v463_v29 = vmax.f32 %v447_v26, 0.0  ;;  %v1501_v26 = vld [vmem:[%s1984_s2 + $0x80] sm:$0xff] }
 0x18e   :  { %v326_v21 = vpop.f32.mrf.mxu1 }
 0x18f   :  { %v424_v27 = vadd.f32 %v423_v19, %v326_v21 }
 0x191   :  { %v448_v28 = vadd.f32 %v1763_v6, %v424_v27 }
 0x193   :  { %v464_v30 = vmax.f32 %v448_v28, 0.0 }
 0x195   :  { %v473_v32 = vpack.c.bf16 %v464_v30, %v463_v29 }
 0x196   :  { %v329_v34 = vpop.f32.mrf.mxu1 }
 0x197   :  { %749 = vmatmul.bf16.gmra.mxu1 %v473_v32  ;;  %v427_v35 = vadd.f32 %v426_v31, %v329_v34  ;;  %v1852_v34 = vld [vmem:[%s1987_s4 + $0x1] ss:$0 sm:$0xff] }
 0x199   :  { %v449_v38 = vadd.f32 %v1763_v6, %v427_v35 }
 0x19b   :  { %v465_v41 = vmax.f32 %v449_v38, 0.0 }
 0x19e   :  { %v331_v37 = vpop.f32.mrf.mxu1 }
 0x19f   :  { %v429_v39 = vadd.f32 %v428_v36, %v331_v37 }
 0x1a1   :  { %v450_v40 = vadd.f32 %v1763_v6, %v429_v39  ;;  %v1500_v6 = vld [vmem:[%s1985_s3 + $0x78] sm:$0xff] }
 0x1a2   :  { %614 = vmatpush.bf16.msrb.mxu0 %v1500_v6 }
 0x1a3   :  { %v466_v42 = vmax.f32 %v450_v40, 0.0 }
 0x1a5   :  { %v474_v44 = vpack.c.bf16 %v466_v42, %v465_v41 }
 0x1a7   :  { %475 = vmatpush.bf16.msrb.mxu3 %v474_v44  ;;  %754 = vmatmul.bf16.gmra.mxu1 %v474_v44 }
 0x1ab   :  { %476 = vmatpush.bf16.msrb.mxu3 %v473_v32 }
 0x1af   :  { %477 = vmatpush.bf16.msrb.mxu3 %v472_v16 }
 0x1b3   :  { %478 = vmatpush.bf16.msrb.mxu3 %v471_v0 }
 0x1b4   :  { %v720_v16 = vpop.f32.mrf.mxu1 }
 0x1b7   :  { %479 = vmatpush.bf16.msrb.mxu3 %v470_v54 }
 0x1bb   :  { %480 = vmatpush.bf16.msrb.mxu3 %v1777_v43  ;;  %v1497_v43 = vld [vmem:[%s1985_s3 + $0x60] sm:$0xff] }
 0x1bc   :  { %v722_v21 = vpop.f32.mrf.mxu1 }
 0x1bf   :  { %481 = vmatpush.bf16.msrb.mxu3 %v1772_v33  ;;  %v1498_v33 = vld [vmem:[%s1985_s3 + $0x68] sm:$0xff] }
 0x1c3   :  { %482 = vmatpush.bf16.msrb.mxu3 %v1767_v18  ;;  %v1499_v18 = vld [vmem:[%s1985_s3 + $0x70] sm:$0xff] }
 0x1c4   :  { %615 = vmatpush.bf16.msrb.mxu0 %v1499_v18  ;;  %v725_v29 = vpop.f32.mrf.mxu1 }
 0x1c6   :  { %483 = vmatmul.bf16.vlgmr.msrb.gmra.mxu3 %v1643_v10 }
 0x1c8   :  { %616 = vmatpush.bf16.msrb.mxu0 %v1498_v33 }
 0x1cc   :  { %617 = vmatpush.bf16.msrb.mxu0 %v1497_v43  ;;  %v727_v30 = vpop.f32.mrf.mxu1 }
 0x1d0   :  { %618 = vmatpush.bf16.msrb.mxu0 %v1496_v45 }
 0x1d4   :  { %619 = vmatpush.bf16.msrb.mxu0 %v1495_v46  ;;  %v730_v38 = vpop.f32.mrf.mxu1 }
 0x1d6   :  { %488 = vmatmul.bf16.gmra.mxu3 %v1691_v22 }
 0x1d8   :  { %620 = vmatpush.bf16.msrb.mxu0 %v1494_v47 }
 0x1dc   :  { %621 = vmatpush.bf16.msrb.mxu0 %v1493_v48  ;;  %v732_v6 = vpop.f32.mrf.mxu1 }
 0x1e0   :  { %1041 = vmatpush.bf16.msra.mxu0 %v1508_v2 }
 0x1e4   :  { %1042 = vmatpush.bf16.msra.mxu0 %v1507_v4 }
 0x1e6   :  { %493 = vmatmul.bf16.gmra.mxu3 %v1648_v11 }
 0x1e8   :  { %1043 = vmatpush.bf16.msra.mxu0 %v1506_v5 }
 0x1ec   :  { %1044 = vmatpush.bf16.msra.mxu0 %v1505_v8 }
 0x1f0   :  { %1045 = vmatpush.bf16.msra.mxu0 %v1504_v14 }
 0x1f4   :  { %1046 = vmatpush.bf16.msra.mxu0 %v1503_v17 }
 0x1f6   :  { %498 = vmatmul.bf16.gmra.mxu3 %v1696_v23 }
 0x1f8   :  { %1047 = vmatpush.bf16.msra.mxu0 %v1502_v20 }
 0x1fc   :  { %1048 = vmatpush.bf16.msra.mxu0 %v1501_v26 }
 0x206   :  { %503 = vmatmul.bf16.gmra.mxu3 %v1653_v12 }
 0x216   :  { %508 = vmatmul.bf16.gmra.mxu3 %v1701_v24 }
 0x226   :  { %513 = vmatmul.bf16.gmra.mxu3 %v1658_v13 }
 0x236   :  { %518 = vmatmul.bf16.gmra.mxu3 %v1706_v25 }
 0x249   :  { %v484_v49 = vpop.f32.mrf.mxu3 }
 0x251   :  { %v486_v50 = vpop.f32.mrf.mxu3 }
 0x252   :  { %v524_v51 = vpack.c.bf16 %v486_v50, %v484_v49  ;;  %v735_v49 = vpop.f32.mrf.mxu1 }
 0x254   :  { %622 = vmatmul.bf16.vlgmr.msrb.gmra.mxu0 %v524_v51 }
 0x259   :  { %v489_v52 = vpop.f32.mrf.mxu3 }
 0x261   :  { %v491_v53 = vpop.f32.mrf.mxu3 }
 0x262   :  { %v525_v54 = vpack.c.bf16 %v491_v53, %v489_v52  ;;  %v737_v53 = vpop.f32.mrf.mxu1 }
 0x264   :  { %627 = vmatmul.bf16.gmra.mxu0 %v525_v54 }
 0x269   :  { %v494_v55 = vpop.f32.mrf.mxu3 }
 0x271   :  { %v496_v56 = vpop.f32.mrf.mxu3 }
 0x272   :  { %v526_v57 = vpack.c.bf16 %v496_v56, %v494_v55 }
 0x274   :  { %632 = vmatmul.bf16.gmra.mxu0 %v526_v57 }
 0x279   :  { %v499_v58 = vpop.f32.mrf.mxu3 }
 0x281   :  { %v501_v59 = vpop.f32.mrf.mxu3 }
 0x282   :  { %v527_v60 = vpack.c.bf16 %v501_v59, %v499_v58 }
 0x284   :  { %637 = vmatmul.bf16.gmra.mxu0 %v527_v60 }
 0x289   :  { %v504_v61 = vpop.f32.mrf.mxu3 }
 0x291   :  { %v506_v62 = vpop.f32.mrf.mxu3 }
 0x292   :  { %v528_v63 = vpack.c.bf16 %v506_v62, %v504_v61  ;;  %v740_v62 = vpop.f32.mrf.mxu1 }
 0x294   :  { %642 = vmatmul.bf16.gmra.mxu0 %v528_v63 }
 0x299   :  { %v509_v0 = vpop.f32.mrf.mxu3 }
 0x29a   :  { %v742_v4 = vpop.f32.mrf.mxu1 }
 0x2a1   :  { %v511_v1 = vpop.f32.mrf.mxu3 }
 0x2a2   :  { %v529_v3 = vpack.c.bf16 %v511_v1, %v509_v0 }
 0x2a4   :  { %647 = vmatmul.bf16.gmra.mxu0 %v529_v3 }
 0x2a9   :  { %v514_v7 = vpop.f32.mrf.mxu3 }
 0x2b1   :  { %v516_v9 = vpop.f32.mrf.mxu3 }
 0x2b2   :  { %v530_v15 = vpack.c.bf16 %v516_v9, %v514_v7 }
 0x2b4   :  { %652 = vmatmul.bf16.gmra.mxu0 %v530_v15  ;;  %v745_v15 = vpop.f32.mrf.mxu1 }
 0x2b9   :  { %v519_v19 = vpop.f32.mrf.mxu3 }
 0x2c1   :  { %v521_v27 = vpop.f32.mrf.mxu3 }
 0x2c2   :  { %v531_v28 = vpack.c.bf16 %v521_v27, %v519_v19 }
 0x2c4   :  { %657 = vmatmul.bf16.gmra.mxu0 %v531_v28  ;;  %v747_v28 = vpop.f32.mrf.mxu1 }
 0x2d1   :  { %v623_v31 = vpop.f32.mrf.mxu0 }
 0x2d2   :  { %v721_v32 = vadd.f32 %v720_v16, %v623_v31 }
 0x2d4   :  { %v765_v36 = vadd.f32 %v1852_v34, %v721_v32 }
 0x2d6   :  { %v781_v40 = vmax.f32 %v765_v36, 0.0  ;;  %v750_v36 = vpop.f32.mrf.mxu1 }
 0x2d9   :  { %v625_v35 = vpop.f32.mrf.mxu0 }
 0x2da   :  { %v723_v37 = vadd.f32 %v722_v21, %v625_v35 }
 0x2dc   :  { %v766_v39 = vadd.f32 %v1852_v34, %v723_v37 }
 0x2de   :  { %v782_v41 = vmax.f32 %v766_v39, 0.0 }
 0x2e0   :  { %v1856_v42 = vpack.c.bf16 %v782_v41, %v781_v40 }
 0x2e1   :  { %v628_v44 = vpop.f32.mrf.mxu0 }
 0x2e2   :  { %1049 = vmatmul.bf16.vlgmr.msra.gmra.mxu0 %v1856_v42  ;;  %v726_v18 = vadd.f32 %v725_v29, %v628_v44  ;;  %v752_v44 = vpop.f32.mrf.mxu1 }
 0x2e4   :  { %v767_v43 = vadd.f32 %v1852_v34, %v726_v18 }
 0x2e6   :  { %v783_v47 = vmax.f32 %v767_v43, 0.0 }
 0x2e9   :  { %v630_v33 = vpop.f32.mrf.mxu0 }
 0x2ea   :  { %v728_v45 = vadd.f32 %v727_v30, %v630_v33 }
 0x2ec   :  { %v768_v46 = vadd.f32 %v1852_v34, %v728_v45 }
 0x2ee   :  { %v784_v48 = vmax.f32 %v768_v46, 0.0 }
 0x2f0   :  { %v1861_v50 = vpack.c.bf16 %v784_v48, %v783_v47  ;;  %v755_v48 = vpop.f32.mrf.mxu1 }
 0x2f1   :  { %v633_v51 = vpop.f32.mrf.mxu0 }
 0x2f2   :  { %1054 = vmatmul.bf16.gmra.mxu0 %v1861_v50  ;;  %v731_v52 = vadd.f32 %v730_v38, %v633_v51 }
 0x2f4   :  { %v769_v55 = vadd.f32 %v1852_v34, %v731_v52 }
 0x2f6   :  { %v785_v58 = vmax.f32 %v769_v55, 0.0 }
 0x2f9   :  { %v635_v54 = vpop.f32.mrf.mxu0 }
 0x2fa   :  { %v733_v56 = vadd.f32 %v732_v6, %v635_v54 }
 0x2fc   :  { %v770_v57 = vadd.f32 %v1852_v34, %v733_v56 }
 0x2fe   :  { %v786_v59 = vmax.f32 %v770_v57, 0.0 }
 0x300   :  { %v1866_v60 = vpack.c.bf16 %v786_v59, %v785_v58 }
 0x301   :  { %v638_v61 = vpop.f32.mrf.mxu0 }
 0x302   :  { %1059 = vmatmul.bf16.gmra.mxu0 %v1866_v60  ;;  %v736_v63 = vadd.f32 %v735_v49, %v638_v61 }
 0x304   :  { %v771_v1 = vadd.f32 %v1852_v34, %v736_v63 }
 0x306   :  { %v787_v5 = vmax.f32 %v771_v1, 0.0 }
 0x309   :  { %v640_v0 = vpop.f32.mrf.mxu0 }
 0x30a   :  { %v738_v2 = vadd.f32 %v737_v53, %v640_v0  ;;  %v757_v53 = vpop.f32.mrf.mxu1 }
 0x30c   :  { %v772_v3 = vadd.f32 %v1852_v34, %v738_v2 }
 0x30e   :  { %v788_v7 = vmax.f32 %v772_v3, 0.0 }
 0x310   :  { %v800_v8 = vpack.c.bf16 %v788_v7, %v787_v5 }
 0x311   :  { %v643_v9 = vpop.f32.mrf.mxu0 }
 0x312   :  { %1064 = vmatmul.bf16.gmra.mxu0 %v800_v8  ;;  %v741_v14 = vadd.f32 %v740_v62, %v643_v9 }
 0x314   :  { %v773_v17 = vadd.f32 %v1852_v34, %v741_v14 }
 0x316   :  { %v789_v21 = vmax.f32 %v773_v17, 0.0 }
 0x319   :  { %v645_v16 = vpop.f32.mrf.mxu0 }
 0x31a   :  { %v743_v19 = vadd.f32 %v742_v4, %v645_v16 }
 0x31c   :  { %v774_v20 = vadd.f32 %v1852_v34, %v743_v19 }
 0x31e   :  { %v790_v26 = vmax.f32 %v774_v20, 0.0 }
 0x320   :  { %v801_v27 = vpack.c.bf16 %v790_v26, %v789_v21 }
 0x321   :  { %v648_v29 = vpop.f32.mrf.mxu0 }
 0x322   :  { %1069 = vmatmul.bf16.gmra.mxu0 %v801_v27  ;;  %v746_v30 = vadd.f32 %v745_v15, %v648_v29 }
 0x324   :  { %v775_v32 = vadd.f32 %v1852_v34, %v746_v30 }
 0x326   :  { %v791_v38 = vmax.f32 %v775_v32, 0.0 }
 0x329   :  { %v650_v31 = vpop.f32.mrf.mxu0 }
 0x32a   :  { %v748_v35 = vadd.f32 %v747_v28, %v650_v31  ;;  %v1917_v31 = vld [vmem:[%s1987_s4 + $0x2] ss:$0 sm:$0xff] }
 0x32c   :  { %v776_v37 = vadd.f32 %v1852_v34, %v748_v35 }
 0x32e   :  { %v792_v39 = vmax.f32 %v776_v37, 0.0 }
 0x330   :  { %v802_v40 = vpack.c.bf16 %v792_v39, %v791_v38 }
 0x331   :  { %v653_v41 = vpop.f32.mrf.mxu0 }
 0x332   :  { %1074 = vmatmul.bf16.gmra.mxu0 %v802_v40  ;;  %v751_v6 = vadd.f32 %v750_v36, %v653_v41 }
 0x334   :  { %v777_v33 = vadd.f32 %v1852_v34, %v751_v6 }
 0x336   :  { %v793_v46 = vmax.f32 %v777_v33, 0.0 }
 0x339   :  { %v655_v18 = vpop.f32.mrf.mxu0 }
 0x33a   :  { %v753_v43 = vadd.f32 %v752_v44, %v655_v18 }
 0x33c   :  { %v778_v45 = vadd.f32 %v1852_v34, %v753_v43 }
 0x33e   :  { %v794_v47 = vmax.f32 %v778_v45, 0.0 }
 0x340   :  { %v803_v49 = vpack.c.bf16 %v794_v47, %v793_v46 }
 0x341   :  { %v658_v51 = vpop.f32.mrf.mxu0 }
 0x342   :  { %1079 = vmatmul.bf16.gmra.mxu0 %v803_v49  ;;  %v756_v52 = vadd.f32 %v755_v48, %v658_v51 }
 0x344   :  { %v779_v55 = vadd.f32 %v1852_v34, %v756_v52 }
 0x346   :  { %v795_v58 = vmax.f32 %v779_v55, 0.0 }
 0x349   :  { %v660_v54 = vpop.f32.mrf.mxu0 }
 0x34a   :  { %v758_v56 = vadd.f32 %v757_v53, %v660_v54 }
 0x34c   :  { %v780_v57 = vadd.f32 %v1852_v34, %v758_v56  ;;  %v1516_v34 = vld [vmem:[%s1985_s3 + $0xb8] sm:$0xff] }
 0x34d   :  { %944 = vmatpush.bf16.msra.mxu3 %v1516_v34 }
 0x34e   :  { %v796_v59 = vmax.f32 %v780_v57, 0.0 }
 0x350   :  { %v804_v61 = vpack.c.bf16 %v796_v59, %v795_v58 }
 0x352   :  { %805 = vmatpush.bf16.msra.mxu2 %v804_v61  ;;  %1084 = vmatmul.bf16.gmra.mxu0 %v804_v61 }
 0x356   :  { %806 = vmatpush.bf16.msra.mxu2 %v803_v49 }
 0x35a   :  { %807 = vmatpush.bf16.msra.mxu2 %v802_v40 }
 0x35e   :  { %808 = vmatpush.bf16.msra.mxu2 %v801_v27 }
 0x35f   :  { %v1050_v21 = vpop.f32.mrf.mxu0 }
 0x362   :  { %809 = vmatpush.bf16.msra.mxu2 %v800_v8 }
 0x366   :  { %810 = vmatpush.bf16.msra.mxu2 %v1866_v60 }
 0x367   :  { %v1052_v29 = vpop.f32.mrf.mxu0 }
 0x36a   :  { %811 = vmatpush.bf16.msra.mxu2 %v1861_v50 }
 0x36e   :  { %812 = vmatpush.bf16.msra.mxu2 %v1856_v42  ;;  %v1515_v42 = vld [vmem:[%s1985_s3 + $0xb0] sm:$0xff] }
 0x36f   :  { %945 = vmatpush.bf16.msra.mxu3 %v1515_v42  ;;  %v1055_v30 = vpop.f32.mrf.mxu0 }
 0x371   :  { %813 = vmatmul.bf16.vlgmr.msra.gmra.mxu2 %v1643_v10  ;;  %v1514_v10 = vld [vmem:[%s1985_s3 + $0xa8] sm:$0xff] }
 0x373   :  { %946 = vmatpush.bf16.msra.mxu3 %v1514_v10 }
 0x377   :  { %v1057_v32 = vpop.f32.mrf.mxu0 }
 0x37f   :  { %v1060_v40 = vpop.f32.mrf.mxu0 }
 0x381   :  { %818 = vmatmul.bf16.gmra.mxu2 %v1691_v22  ;;  %v1511_v22 = vld [vmem:[%s1985_s3 + $0x90] sm:$0xff] }
 0x387   :  { %v1062_v33 = vpop.f32.mrf.mxu0 }
 0x38f   :  { %v1065_v47 = vpop.f32.mrf.mxu0 }
 0x391   :  { %823 = vmatmul.bf16.gmra.mxu2 %v1648_v11  ;;  %v1513_v11 = vld [vmem:[%s1985_s3 + $0xa0] sm:$0xff] }
 0x392   :  { %947 = vmatpush.bf16.msra.mxu3 %v1513_v11 }
 0x397   :  { %v1067_v52 = vpop.f32.mrf.mxu0 }
 0x39f   :  { %v1070_v58 = vpop.f32.mrf.mxu0 }
 0x3a1   :  { %828 = vmatmul.bf16.gmra.mxu2 %v1696_v23  ;;  %v1510_v23 = vld [vmem:[%s1985_s3 + $0x88] sm:$0xff] }
 0x3a7   :  { %v1072_v10 = vpop.f32.mrf.mxu0 }
 0x3b1   :  { %833 = vmatmul.bf16.gmra.mxu2 %v1653_v12  ;;  %v1512_v12 = vld [vmem:[%s1985_s3 + $0x98] sm:$0xff] }
 0x3b2   :  { %948 = vmatpush.bf16.msra.mxu3 %v1512_v12 }
 0x3b6   :  { %949 = vmatpush.bf16.msra.mxu3 %v1511_v22 }
 0x3ba   :  { %950 = vmatpush.bf16.msra.mxu3 %v1510_v23  ;;  %v1075_v23 = vpop.f32.mrf.mxu0 }
 0x3c1   :  { %838 = vmatmul.bf16.gmra.mxu2 %v1701_v24  ;;  %v1509_v24 = vld [vmem:[%s1985_s3 + $0x80] sm:$0xff] }
 0x3c2   :  { %951 = vmatpush.bf16.msra.mxu3 %v1509_v24 }
 0x3d1   :  { %843 = vmatmul.bf16.gmra.mxu2 %v1658_v13 }
 0x3e1   :  { %848 = vmatmul.bf16.gmra.mxu2 %v1706_v25 }
 0x3f4   :  { %v814_v50 = vpop.f32.mrf.mxu2 }
 0x3fc   :  { %v816_v60 = vpop.f32.mrf.mxu2 }
 0x3fd   :  { %v854_v13 = vpack.c.bf16 %v816_v60, %v814_v50 }
 0x3ff   :  { %952 = vmatmul.bf16.vlgmr.msra.gmra.mxu3 %v854_v13  ;;  %v1077_v13 = vpop.f32.mrf.mxu0 }
 0x404   :  { %v819_v62 = vpop.f32.mrf.mxu2 }
 0x40c   :  { %v821_v63 = vpop.f32.mrf.mxu2 }
 0x40d   :  { %v855_v0 = vpack.c.bf16 %v821_v63, %v819_v62 }
 0x40f   :  { %957 = vmatmul.bf16.gmra.mxu3 %v855_v0 }
 0x414   :  { %v824_v1 = vpop.f32.mrf.mxu2 }
 0x41c   :  { %v826_v2 = vpop.f32.mrf.mxu2 }
 0x41d   :  { %v856_v3 = vpack.c.bf16 %v826_v2, %v824_v1 }
 0x41f   :  { %962 = vmatmul.bf16.gmra.mxu3 %v856_v3  ;;  %v1080_v3 = vpop.f32.mrf.mxu0 }
 0x424   :  { %v829_v4 = vpop.f32.mrf.mxu2 }
 0x42c   :  { %v831_v5 = vpop.f32.mrf.mxu2 }
 0x42d   :  { %v857_v7 = vpack.c.bf16 %v831_v5, %v829_v4 }
 0x42f   :  { %967 = vmatmul.bf16.gmra.mxu3 %v857_v7 }
 0x434   :  { %v834_v8 = vpop.f32.mrf.mxu2 }
 0x43c   :  { %v836_v9 = vpop.f32.mrf.mxu2 }
 0x43d   :  { %v858_v14 = vpack.c.bf16 %v836_v9, %v834_v8  ;;  %v1082_v9 = vpop.f32.mrf.mxu0 }
 0x43f   :  { %972 = vmatmul.bf16.gmra.mxu3 %v858_v14 }
 0x444   :  { %v839_v25 = vpop.f32.mrf.mxu2 }
 0x44c   :  { %v841_v15 = vpop.f32.mrf.mxu2 }
 0x44d   :  { %v859_v16 = vpack.c.bf16 %v841_v15, %v839_v25 }
 0x44f   :  { %977 = vmatmul.bf16.gmra.mxu3 %v859_v16  ;;  %v1085_v16 = vpop.f32.mrf.mxu0 }
 0x454   :  { %v844_v17 = vpop.f32.mrf.mxu2 }
 0x45c   :  { %v846_v19 = vpop.f32.mrf.mxu2 }
 0x45d   :  { %v860_v20 = vpack.c.bf16 %v846_v19, %v844_v17 }
 0x45f   :  { %982 = vmatmul.bf16.gmra.mxu3 %v860_v20 }
 0x464   :  { %v849_v26 = vpop.f32.mrf.mxu2 }
 0x46c   :  { %v851_v27 = vpop.f32.mrf.mxu2 }
 0x46d   :  { %v861_v28 = vpack.c.bf16 %v851_v27, %v849_v26 }
 0x46f   :  { %987 = vmatmul.bf16.gmra.mxu3 %v861_v28 }
 0x482   :  { %v953_v35 = vpop.f32.mrf.mxu3 }
 0x483   :  { %v1051_v36 = vadd.f32 %v1050_v21, %v953_v35  ;;  %v1087_v21 = vpop.f32.mrf.mxu0 }
 0x485   :  { %v1095_v37 = vadd.f32 %v1917_v31, %v1051_v36 }
 0x487   :  { %1111 = vst [vmem:[%s1988_s5] sm:$0xff] %v1095_v37 }
 0x48a   :  { %v955_v38 = vpop.f32.mrf.mxu3 }
 0x48b   :  { %v1053_v39 = vadd.f32 %v1052_v29, %v955_v38 }
 0x48d   :  { %v1096_v41 = vadd.f32 %v1917_v31, %v1053_v39 }
 0x48f   :  { %1112 = vst [vmem:[%s1988_s5 + $0x8] sm:$0xff] %v1096_v41 }
 0x492   :  { %v958_v44 = vpop.f32.mrf.mxu3 }
 0x493   :  { %v1056_v6 = vadd.f32 %v1055_v30, %v958_v44 }
 0x495   :  { %v1097_v18 = vadd.f32 %v1917_v31, %v1056_v6 }
 0x497   :  { %1113 = vst [vmem:[%s1988_s5 + $0x10] sm:$0xff] %v1097_v18 }
 0x49a   :  { %v960_v43 = vpop.f32.mrf.mxu3 }
 0x49b   :  { %v1058_v45 = vadd.f32 %v1057_v32, %v960_v43 }
 0x49d   :  { %v1098_v46 = vadd.f32 %v1917_v31, %v1058_v45 }
 0x49f   :  { %1114 = vst [vmem:[%s1988_s5 + $0x18] sm:$0xff] %v1098_v46 }
 0x4a2   :  { %v963_v48 = vpop.f32.mrf.mxu3 }
 0x4a3   :  { %v1061_v49 = vadd.f32 %v1060_v40, %v963_v48 }
 0x4a5   :  { %v1099_v51 = vadd.f32 %v1917_v31, %v1061_v49 }
 0x4a7   :  { %1115 = vst [vmem:[%s1988_s5 + $0x20] sm:$0xff] %v1099_v51 }
 0x4aa   :  { %v965_v53 = vpop.f32.mrf.mxu3 }
 0x4ab   :  { %v1063_v54 = vadd.f32 %v1062_v33, %v965_v53 }
 0x4ad   :  { %v1100_v55 = vadd.f32 %v1917_v31, %v1063_v54 }
 0x4af   :  { %1116 = vst [vmem:[%s1988_s5 + $0x28] sm:$0xff] %v1100_v55 }
 0x4b2   :  { %v968_v56 = vpop.f32.mrf.mxu3 }
 0x4b3   :  { %v1066_v57 = vadd.f32 %v1065_v47, %v968_v56 }
 0x4b5   :  { %v1101_v59 = vadd.f32 %v1917_v31, %v1066_v57 }
 0x4b7   :  { %1117 = vst [vmem:[%s1988_s5 + $0x30] sm:$0xff] %v1101_v59 }
 0x4ba   :  { %v970_v61 = vpop.f32.mrf.mxu3 }
 0x4bb   :  { %v1068_v34 = vadd.f32 %v1067_v52, %v970_v61 }
 0x4bd   :  { %v1102_v42 = vadd.f32 %v1917_v31, %v1068_v34 }
 0x4bf   :  { %1118 = vst [vmem:[%s1988_s5 + $0x38] sm:$0xff] %v1102_v42 }
 0x4c2   :  { %v973_v11 = vpop.f32.mrf.mxu3 }
 0x4c3   :  { %v1071_v12 = vadd.f32 %v1070_v58, %v973_v11 }
 0x4c5   :  { %v1103_v22 = vadd.f32 %v1917_v31, %v1071_v12 }
 0x4c7   :  { %1119 = vst [vmem:[%s1988_s5 + $0x40] sm:$0xff] %v1103_v22 }
 0x4ca   :  { %v975_v24 = vpop.f32.mrf.mxu3 }
 0x4cb   :  { %v1073_v50 = vadd.f32 %v1072_v10, %v975_v24 }
 0x4cd   :  { %v1104_v60 = vadd.f32 %v1917_v31, %v1073_v50 }
 0x4cf   :  { %1120 = vst [vmem:[%s1988_s5 + $0x48] sm:$0xff] %v1104_v60 }
 0x4d2   :  { %v978_v62 = vpop.f32.mrf.mxu3 }
 0x4d3   :  { %v1076_v63 = vadd.f32 %v1075_v23, %v978_v62 }
 0x4d5   :  { %v1105_v0 = vadd.f32 %v1917_v31, %v1076_v63 }
 0x4d7   :  { %1121 = vst [vmem:[%s1988_s5 + $0x50] sm:$0xff] %v1105_v0 }
 0x4da   :  { %v980_v1 = vpop.f32.mrf.mxu3 }
 0x4db   :  { %v1078_v2 = vadd.f32 %v1077_v13, %v980_v1 }
 0x4dd   :  { %v1106_v4 = vadd.f32 %v1917_v31, %v1078_v2 }
 0x4df   :  { %1122 = vst [vmem:[%s1988_s5 + $0x58] sm:$0xff] %v1106_v4 }
 0x4e2   :  { %v983_v5 = vpop.f32.mrf.mxu3 }
 0x4e3   :  { %v1081_v7 = vadd.f32 %v1080_v3, %v983_v5 }
 0x4e5   :  { %v1107_v8 = vadd.f32 %v1917_v31, %v1081_v7 }
 0x4e7   :  { %1123 = vst [vmem:[%s1988_s5 + $0x60] sm:$0xff] %v1107_v8 }
 0x4ea   :  { %v985_v14 = vpop.f32.mrf.mxu3 }
 0x4eb   :  { %v1083_v25 = vadd.f32 %v1082_v9, %v985_v14 }
 0x4ed   :  { %v1108_v15 = vadd.f32 %v1917_v31, %v1083_v25 }
 0x4ef   :  { %1124 = vst [vmem:[%s1988_s5 + $0x68] sm:$0xff] %v1108_v15 }
 0x4f2   :  { %v988_v17 = vpop.f32.mrf.mxu3 }
 0x4f3   :  { %v1086_v19 = vadd.f32 %v1085_v16, %v988_v17 }
 0x4f5   :  { %v1109_v20 = vadd.f32 %v1917_v31, %v1086_v19 }
 0x4f7   :  { %1125 = vst [vmem:[%s1988_s5 + $0x70] sm:$0xff] %v1109_v20 }
 0x4fa   :  { %v990_v26 = vpop.f32.mrf.mxu3 }
 0x4fb   :  { %v1088_v27 = vadd.f32 %v1087_v21, %v990_v26 }
 0x4fd   :  { %v1110_v28 = vadd.f32 %v1917_v31, %v1088_v27 }
 0x4ff   :  { %1126 = vst [vmem:[%s1988_s5 + $0x78] sm:$0xff] %v1110_v28 }

</bundles_post_ra>
